<compile_context>
chip_gen: v5e
topology: v5e:2x2
jax: 0.10.0
libtpu: 0.0.40
codegen_flags: <defaults>
</compile_context>

<pallas_src>
import functools

import jax
import jax.numpy as jnp
from jax.experimental import pallas as pl
from jax.experimental.pallas import tpu as pltpu


def vgg_head_kernel(x_ref, w1_ref, b1_ref, w2_ref, b2_ref, w3_ref, b3_ref,
                    out_ref):
    # In-kernel cast of the f32 activation tile to the MXU compute dtype
    # (rides the VPU slot; avoids a standalone XLA convert + HBM round trip).
    x = x_ref[...].astype(w1_ref.dtype)

    # fc1 + ReLU: MXU matmul with f32 accumulation, f32 bias/ReLU epilogue.
    h = jnp.dot(x, w1_ref[...], preferred_element_type=jnp.float32)
    h = jnp.maximum(h + b1_ref[...], 0.0)

    # fc2 + ReLU (activation re-cast to bf16 for the MXU, f32 accumulate).
    h = jnp.dot(h.astype(w2_ref.dtype), w2_ref[...],
                preferred_element_type=jnp.float32)
    h = jnp.maximum(h + b2_ref[...], 0.0)

    # fc3 (final Linear(4096,512) analogue): bias add, NO ReLU.
    o = jnp.dot(h.astype(w3_ref.dtype), w3_ref[...],
                preferred_element_type=jnp.float32)
    out_ref[...] = (o + b3_ref[...]).astype(out_ref.dtype)


def prepare_params(w1, b1, w2, b2, w3, b3, compute_dtype=jnp.bfloat16):
    """One-time parameter prep (hoisted out of the per-call path).

    Torch nn.Linear layout is (out, in); pre-transpose to (in, out) so the
    kernel does plain row-major x @ W matmuls, and pre-cast weights to the
    MXU compute dtype.  Biases stay f32 for the f32 epilogue.
    """
    w1t = jnp.transpose(w1).astype(compute_dtype)       # [feat, h1]
    w2t = jnp.transpose(w2).astype(compute_dtype)       # [h1, h2]
    w3t = jnp.transpose(w3).astype(compute_dtype)       # [h2, out]
    b1r = b1.reshape(1, -1).astype(jnp.float32)
    b2r = b2.reshape(1, -1).astype(jnp.float32)
    b3r = b3.reshape(1, -1).astype(jnp.float32)
    return w1t, b1r, w2t, b2r, w3t, b3r


def _pick_tb(batch):
    # Prefer >= 4 grid steps (>= 2 per TensorCore on v7x megacore) with the
    # largest tile <= 256; tiles are multiples of 16 so bf16 output stores
    # stay sublane-packed (no masked partial stores).  Fall back to >= 2
    # steps, then to a single whole-batch step for tiny batches.
    for min_steps in (4, 2):
        for tb in (256, 128, 64, 32, 16):
            if batch % tb == 0 and batch // tb >= min_steps:
                return tb
    return batch


@functools.partial(jax.jit, static_argnames=("tb", "out_dtype"))
def vgg_head_forward(x, w1t, b1, w2t, b2, w3t, b3, *, tb=None, out_dtype=None):
    """x: [B, feat] float32; params from prepare_params(); returns [B, out]."""
    B, feat = x.shape
    h1 = w1t.shape[1]
    h2 = w2t.shape[1]
    out_dim = w3t.shape[1]
    out_dtype = jnp.dtype(x.dtype if out_dtype is None else out_dtype)

    if tb is None:
        tb = _pick_tb(B)
    assert B % tb == 0, (B, tb)
    grid = (B // tb,)

    # VMEM budget: x/out tiles double-buffered, weights single-buffered
    # (Buffered(1)), plus f32 intermediate activations; 2x margin, clamped to
    # a range safe on all generations (v7x physical VMEM is 64 MiB).
    x_it = jnp.dtype(x.dtype).itemsize
    w_it = jnp.dtype(w1t.dtype).itemsize
    o_it = out_dtype.itemsize
    weights_bytes = (feat * h1 + h1 * h2 + h2 * out_dim) * w_it
    bias_bytes = (h1 + h2 + out_dim) * 4
    per_step = (2 * tb * feat * x_it            # x tile (double-buffered)
                + 2 * tb * out_dim * o_it       # out tile (double-buffered)
                + tb * (h1 + h2) * 4)           # f32 intermediates
    vmem_limit = int(min(max(2 * (per_step + weights_bytes + bias_bytes),
                             8 * 1024 * 1024), 32 * 1024 * 1024))

    # Grid-invariant operands: index (0, 0) every step + single buffer.
    inv = dict(pipeline_mode=pl.Buffered(1))

    out = pl.pallas_call(
        vgg_head_kernel,
        out_shape=jax.ShapeDtypeStruct((B, out_dim), out_dtype),
        grid_spec=pltpu.PrefetchScalarGridSpec(
            num_scalar_prefetch=0,
            grid=grid,
            in_specs=[
                pl.BlockSpec((tb, feat), lambda i: (i, 0)),          # x tile
                pl.BlockSpec((feat, h1), lambda i: (0, 0), **inv),   # W1^T
                pl.BlockSpec((1, h1), lambda i: (0, 0), **inv),      # b1
                pl.BlockSpec((h1, h2), lambda i: (0, 0), **inv),     # W2^T
                pl.BlockSpec((1, h2), lambda i: (0, 0), **inv),      # b2
                pl.BlockSpec((h2, out_dim), lambda i: (0, 0), **inv),  # W3^T
                pl.BlockSpec((1, out_dim), lambda i: (0, 0), **inv),   # b3
            ],
            out_specs=pl.BlockSpec((tb, out_dim), lambda i: (i, 0)),
        ),
        compiler_params=pltpu.CompilerParams(
            dimension_semantics=("parallel",),   # batch axis -> both TCs on v7x
            vmem_limit_bytes=vmem_limit,
        ),
    )(x, w1t, b1, w2t, b2, w3t, b3)
    return out


def reference_forward_f32(x, w1, b1, w2, b2, w3, b3):
    h = jnp.maximum(x @ w1.T + b1, 0.0)
    h = jnp.maximum(h @ w2.T + b2, 0.0)
    return h @ w3.T + b3


def reference_forward_matched(x, w1t, b1, w2t, b2, w3t, b3):
    # Same precision pattern as the kernel: bf16 inputs/weights, f32 accumulate
    # and f32 epilogue, bf16 re-cast of activations between layers.
    h = jnp.dot(x.astype(w1t.dtype), w1t, preferred_element_type=jnp.float32)
    h = jnp.maximum(h + b1, 0.0)
    h = jnp.dot(h.astype(w2t.dtype), w2t, preferred_element_type=jnp.float32)
    h = jnp.maximum(h + b2, 0.0)
    o = jnp.dot(h.astype(w3t.dtype), w3t, preferred_element_type=jnp.float32)
    return o + b3


if __name__ == "__main__":
    # Small stand-in dims for (25088 -> 4096 -> 4096 -> 512); batch sized so
    # the tile picker gives tb=128 and a 4-step parallel grid.
    B, feat, h1, h2, out_dim = 512, 256, 128, 128, 128

    key = jax.random.PRNGKey(0)
    k = jax.random.split(key, 7)

    x = jax.random.normal(k[0], (B, feat), dtype=jnp.float32)
    # torch.nn.Linear-style params, layout (out, in)
    be1 = 1.0 / (feat ** 0.5)
    be2 = 1.0 / (h1 ** 0.5)
    be3 = 1.0 / (h2 ** 0.5)
    w1 = jax.random.uniform(k[1], (h1, feat), jnp.float32, -be1, be1)
    b1 = jax.random.uniform(k[2], (h1,), jnp.float32, -be1, be1)
    w2 = jax.random.uniform(k[3], (h2, h1), jnp.float32, -be2, be2)
    b2 = jax.random.uniform(k[4], (h2,), jnp.float32, -be2, be2)
    w3 = jax.random.uniform(k[5], (out_dim, h2), jnp.float32, -be3, be3)
    b3 = jax.random.uniform(k[6], (out_dim,), jnp.float32, -be3, be3)

    # One-time parameter preparation (transposes/casts hoisted out of the call).
    params = prepare_params(w1, b1, w2, b2, w3, b3)

    # f32-output path (matches the module's output dtype).
    y = vgg_head_forward(x, *params)
    jax.block_until_ready(y)
    assert y.shape == (B, out_dim) and y.dtype == x.dtype

    # Tight check against a precision-matched reference (bf16 inputs, f32 acc).
    y_m = reference_forward_matched(x, *params)
    assert jnp.allclose(y, y_m, atol=1e-2, rtol=1e-2)

    # Loose sanity check against the pure-f32 reference (bf16 quantization).
    y_f = reference_forward_f32(x, w1, b1, w2, b2, w3, b3)
    assert jnp.allclose(y, y_f, atol=1e-1, rtol=1e-1)

    # Optional bf16 output path (halves output HBM writeback).
    y_bf16 = vgg_head_forward(x, *params, out_dtype=jnp.bfloat16)
    jax.block_until_ready(y_bf16)
    assert y_bf16.shape == (B, out_dim) and y_bf16.dtype == jnp.bfloat16
    assert jnp.allclose(y_bf16.astype(jnp.float32), y_m, atol=5e-2, rtol=5e-2)

    print("KERNEL_OK")
</pallas_src>

<mosaic_0001>
module attributes {stable_mosaic.version = 11 : i64} {
  func.func @vgg_head_kernel(%arg0: i32, %arg1: memref<128x256xf32, #tpu.memory_space<vmem>>, %arg2: memref<256x128xbf16, #tpu.memory_space<vmem>>, %arg3: memref<1x128xf32, #tpu.memory_space<vmem>>, %arg4: memref<128x128xbf16, #tpu.memory_space<vmem>>, %arg5: memref<1x128xf32, #tpu.memory_space<vmem>>, %arg6: memref<128x128xbf16, #tpu.memory_space<vmem>>, %arg7: memref<1x128xf32, #tpu.memory_space<vmem>>, %arg8: memref<128x128xf32, #tpu.memory_space<vmem>>) attributes {dimension_semantics = [#tpu.dimension_semantics<parallel>], iteration_bounds = array<i64: 4>, scalar_prefetch = 0 : i64, scratch_operands = 0 : i64, tpu.core_type = #tpu.core_type<tc>, window_params = [{transform_indices = @transform_0, window_bounds = array<i64: 128, 256>}, {pipeline_mode = #tpu.pipeline_mode<synchronous>, transform_indices = @transform_1, window_bounds = array<i64: 256, 128>}, {pipeline_mode = #tpu.pipeline_mode<synchronous>, transform_indices = @transform_2, window_bounds = array<i64: 1, 128>}, {pipeline_mode = #tpu.pipeline_mode<synchronous>, transform_indices = @transform_3, window_bounds = array<i64: 128, 128>}, {pipeline_mode = #tpu.pipeline_mode<synchronous>, transform_indices = @transform_4, window_bounds = array<i64: 1, 128>}, {pipeline_mode = #tpu.pipeline_mode<synchronous>, transform_indices = @transform_5, window_bounds = array<i64: 128, 128>}, {pipeline_mode = #tpu.pipeline_mode<synchronous>, transform_indices = @transform_6, window_bounds = array<i64: 1, 128>}, {transform_indices = @transform_7, window_bounds = array<i64: 128, 128>}]} {
    %c0 = arith.constant 0 : index
    %c0_0 = arith.constant 0 : index
    %0 = vector.load %arg1[%c0, %c0_0] : memref<128x256xf32, #tpu.memory_space<vmem>>, vector<128x256xf32>
    %1 = arith.truncf %0 : vector<128x256xf32> to vector<128x256xbf16>
    %c0_1 = arith.constant 0 : index
    %c0_2 = arith.constant 0 : index
    %2 = vector.load %arg2[%c0_1, %c0_2] : memref<256x128xbf16, #tpu.memory_space<vmem>>, vector<256x128xbf16>
    %cst = arith.constant dense<0.000000e+00> : vector<128x128xf32>
    %3 = tpu.matmul %1, %2, %cst {dimension_numbers = #tpu.dot_dimension_numbers<[1], [0], [0], [1], [0, 0, 1, 1], [], []>} : vector<128x256xbf16>, vector<256x128xbf16>, vector<128x128xf32> -> vector<128x128xf32>
    %c0_3 = arith.constant 0 : index
    %c0_4 = arith.constant 0 : index
    %4 = vector.load %arg3[%c0_3, %c0_4] : memref<1x128xf32, #tpu.memory_space<vmem>>, vector<1x128xf32>
    %5 = vector.broadcast %4 : vector<1x128xf32> to vector<128x128xf32>
    %6 = arith.addf %3, %5 : vector<128x128xf32>
    %cst_5 = arith.constant 0.000000e+00 : f32
    %7 = vector.broadcast %cst_5 : f32 to vector<128x128xf32>
    %8 = arith.maximumf %6, %7 : vector<128x128xf32>
    %9 = arith.truncf %8 : vector<128x128xf32> to vector<128x128xbf16>
    %c0_6 = arith.constant 0 : index
    %c0_7 = arith.constant 0 : index
    %10 = vector.load %arg4[%c0_6, %c0_7] : memref<128x128xbf16, #tpu.memory_space<vmem>>, vector<128x128xbf16>
    %cst_8 = arith.constant dense<0.000000e+00> : vector<128x128xf32>
    %11 = tpu.matmul %9, %10, %cst_8 {dimension_numbers = #tpu.dot_dimension_numbers<[1], [0], [0], [1], [0, 0, 1, 1], [], []>} : vector<128x128xbf16>, vector<128x128xbf16>, vector<128x128xf32> -> vector<128x128xf32>
    %c0_9 = arith.constant 0 : index
    %c0_10 = arith.constant 0 : index
    %12 = vector.load %arg5[%c0_9, %c0_10] : memref<1x128xf32, #tpu.memory_space<vmem>>, vector<1x128xf32>
    %13 = vector.broadcast %12 : vector<1x128xf32> to vector<128x128xf32>
    %14 = arith.addf %11, %13 : vector<128x128xf32>
    %cst_11 = arith.constant 0.000000e+00 : f32
    %15 = vector.broadcast %cst_11 : f32 to vector<128x128xf32>
    %16 = arith.maximumf %14, %15 : vector<128x128xf32>
    %17 = arith.truncf %16 : vector<128x128xf32> to vector<128x128xbf16>
    %c0_12 = arith.constant 0 : index
    %c0_13 = arith.constant 0 : index
    %18 = vector.load %arg6[%c0_12, %c0_13] : memref<128x128xbf16, #tpu.memory_space<vmem>>, vector<128x128xbf16>
    %cst_14 = arith.constant dense<0.000000e+00> : vector<128x128xf32>
    %19 = tpu.matmul %17, %18, %cst_14 {dimension_numbers = #tpu.dot_dimension_numbers<[1], [0], [0], [1], [0, 0, 1, 1], [], []>} : vector<128x128xbf16>, vector<128x128xbf16>, vector<128x128xf32> -> vector<128x128xf32>
    %c0_15 = arith.constant 0 : index
    %c0_16 = arith.constant 0 : index
    %20 = vector.load %arg7[%c0_15, %c0_16] : memref<1x128xf32, #tpu.memory_space<vmem>>, vector<1x128xf32>
    %21 = vector.broadcast %20 : vector<1x128xf32> to vector<128x128xf32>
    %22 = arith.addf %19, %21 : vector<128x128xf32>
    %c0_17 = arith.constant 0 : index
    %c0_18 = arith.constant 0 : index
    %23 = vector.load %arg8[%c0_17, %c0_18] : memref<128x128xf32, #tpu.memory_space<vmem>>, vector<128x128xf32>
    tpu.vector_store %arg8[%c0_17, %c0_18], %22 {strides = array<i32>} : memref<128x128xf32, #tpu.memory_space<vmem>>, vector<128x128xf32>,
    return
  }
  func.func @transform_0(%arg0: i32) -> (i32, i32) {
    %c0_i32 = arith.constant 0 : i32
    %c0_i32_0 = arith.constant 0 : i32
    return %arg0, %c0_i32 : i32, i32
  }
  func.func @transform_1(%arg0: i32) -> (i32, i32) {
    %c0_i32 = arith.constant 0 : i32
    %c0_i32_0 = arith.constant 0 : i32
    %c0_i32_1 = arith.constant 0 : i32
    return %c0_i32, %c0_i32_0 : i32, i32
  }
  func.func @transform_2(%arg0: i32) -> (i32, i32) {
    %c0_i32 = arith.constant 0 : i32
    %c0_i32_0 = arith.constant 0 : i32
    %c0_i32_1 = arith.constant 0 : i32
    return %c0_i32, %c0_i32_0 : i32, i32
  }
  func.func @transform_3(%arg0: i32) -> (i32, i32) {
    %c0_i32 = arith.constant 0 : i32
    %c0_i32_0 = arith.constant 0 : i32
    %c0_i32_1 = arith.constant 0 : i32
    return %c0_i32, %c0_i32_0 : i32, i32
  }
  func.func @transform_4(%arg0: i32) -> (i32, i32) {
    %c0_i32 = arith.constant 0 : i32
    %c0_i32_0 = arith.constant 0 : i32
    %c0_i32_1 = arith.constant 0 : i32
    return %c0_i32, %c0_i32_0 : i32, i32
  }
  func.func @transform_5(%arg0: i32) -> (i32, i32) {
    %c0_i32 = arith.constant 0 : i32
    %c0_i32_0 = arith.constant 0 : i32
    %c0_i32_1 = arith.constant 0 : i32
    return %c0_i32, %c0_i32_0 : i32, i32
  }
  func.func @transform_6(%arg0: i32) -> (i32, i32) {
    %c0_i32 = arith.constant 0 : i32
    %c0_i32_0 = arith.constant 0 : i32
    %c0_i32_1 = arith.constant 0 : i32
    return %c0_i32, %c0_i32_0 : i32, i32
  }
  func.func @transform_7(%arg0: i32) -> (i32, i32) {
    %c0_i32 = arith.constant 0 : i32
    %c0_i32_0 = arith.constant 0 : i32
    return %arg0, %c0_i32 : i32, i32
  }
}

</mosaic_0001>

<bundles_post_ra>
// kernel: vgg_head_forward.1
= control target key start
LH: loop header
LB: loop body
LE: loop exit
PB: predicated region body
PF: predicated region fallthrough
CT: control target
= control target key end

     0   :  { %s1800_s0 = inlined_call_operand.hbm [shape: f32[512,256], index: 0, kind: input, shape index: {}]   ;;  %s1801_s1 = inlined_call_operand.hbm [shape: bf16[256,128], index: 1, kind: input, shape index: {}]   ;;  %s1802_s2 = inlined_call_operand.vmem [shape: f32[1,128], index: 2, kind: input, shape index: {}]   ;;  %s1803_s3 = inlined_call_operand.hbm [shape: bf16[128,128], index: 3, kind: input, shape index: {}]   ;;  %s1804_s4 = inlined_call_operand.vmem [shape: f32[1,128], index: 4, kind: input, shape index: {}]   ;;  %s1805_s5 = inlined_call_operand.hbm [shape: bf16[128,128], index: 5, kind: input, shape index: {}]   ;;  %s1806_s6 = inlined_call_operand.vmem [shape: f32[1,128], index: 6, kind: input, shape index: {}]   ;;  %s1807_s7 = inlined_call_operand.hbm [shape: f32[512,128], index: 7, kind: output, shape index: {}]  }
   0x1   :  { %1808 = sst [smem:[#allocation15_spill]] %s1801_s1 }
   0x2   :  { %12 = vsyncpa [#allocation3], 0 }
   0x3   :  { %14 = vsyncpa [#allocation3 + $0x1], 0 }
   0x4   :  { %15 = vsyncpa [#allocation6], 0 }
   0x5   :  { %16 = vsyncpa [#allocation9], 0 }
   0x6   :  { %17 = vsyncpa [#allocation4], 0 }
   0x7   :  { %19 = vsyncpa [#allocation4 + $0x1], 0  ;;  %s1561_s24 = smov 0   ;;  %s1563_s25 = smov 0  }
   0x8   :  { %s1565_s26 = smov 0   ;;  %s1567_s27 = smov 0  }
   0x9 LB: > { %s1582_s28 = sadd.s32 4294967295, %s1510_s27   ;;  %s1046_s29 = sadd.s32 4294967294, %s1510_s27   ;;  %s1510_s27 = sphi %s1567_s27, %s1819_s27   ;;  %s1506_s26 = sphi %s1565_s26, %s1818_s26   ;;  %s1502_s25 = sphi %s1563_s25, %s1817_s25   ;;  %s1498_s24 = sphi %s1561_s24, %s1816_s24  }
   0xa   : > { %p45_p0 = scmp.ne.s32.totalorder %s1502_s25, %s1498_s24  ;;  %p46_p1 = scmp.eq.s32.totalorder %s1582_s28, 0 }
   0xb   : > { %p195_p2 = scmp.eq.s32.totalorder %s1582_s28, 3  ;;  %p201_p3 = scmp.eq.s32.totalorder %s1046_s29, 3 }
   0xc   : > { %p1591_p4 = por %p46_p1, %p45_p0  ;;  %p1047_p5 = scmp.ge.s32.totalorder %s1510_s27, 1 }
   0xd   : > { %p1596_p6 = por %p201_p3, %p45_p0  ;;  %p208_p7 = scmp.lt.s32.totalorder %s1510_s27, 5 }
   0xe   : > { %s1811_s1 = sld [smem:[#allocation15_spill]]  ;;  %s1512_s13 = smov [#allocation5]  }
   0xf   : > { %p1604_p8 = pnand %p1047_p5, %p208_p7  ;;  %s221_s14 = sshll.u32 %s1512_s13, 4  ;;  %s222_s14 = int_to_ptr.vmem [resolvable:$true] %s221_s14 }
  0x10   : > { %s236_s18 = sshll.u32 %s1803_s3, 4  ;;  %s1513_s19 = smov 64   ;;  %s237_s18 = int_to_ptr.hbm [resolvable:$true] %s236_s18 }
  0x11   : > { %p1246_p9 = pneg %p1604_p8  ;;  %s1514_s20 = smov 4  }
  0x12   : > { %s1515_s21 = smov [#allocation7]   ;;  %s253_s9 = sshll.u32 %s1805_s5, 4  ;;  %s254_s9 = int_to_ptr.hbm [resolvable:$true] %s253_s9 }
  0x13   : > { %p1612_p10 = pnand %p1246_p9, %p46_p1  ;;  %s238_s22 = sshll.u32 %s1515_s21, 4  ;;  %s239_s22 = int_to_ptr.vmem [resolvable:$true] %s238_s22 }
  0x14   : > { %s219_s11 = sshll.u32 %s1811_s1, 4  ;;  %s1516_s10 = smov [#allocation8]   ;;  %s220_s11 = int_to_ptr.hbm [resolvable:$true] %s219_s11 }
  0x15   : > { %1249 = dma.hbm_to_vmem [thread:$0]  (!%p1612_p10), %s220_s11, 2048, %s222_s14, [#allocation6], %s1513_s19, %s1513_s19, %s1514_s20  }
  0x16   : > { %1252 = dma.hbm_to_vmem [thread:$0]  (!%p1612_p10), %s237_s18, 1024, %s239_s22, [#allocation6], %s1513_s19, %s1513_s19, %s1514_s20  }
  0x17   : > { %s255_s13 = sshll.u32 %s1516_s10, 4  ;;  %s1627_s11 = sadd.s32 1, %s1510_s27   ;;  %s256_s13 = int_to_ptr.vmem [resolvable:$true] %s255_s13 }
  0x18   : > { %1255 = dma.hbm_to_vmem [thread:$0]  (!%p1612_p10), %s254_s9, 1024, %s256_s13, [#allocation9], %s1513_s19, %s1513_s19, %s1514_s20  }
  0x19   : > { %s29_s14 = ssub.s32 %s1510_s27, %s1627_s11  ;;  %s32_s16 = sadd.s32 1, %s1506_s26 }
  0x1a   : > { %p30_p11 = scmp.eq.s32.totalorder %s29_s14, 0  ;;  %p39_p12 = scmp.ne.s32.totalorder %s1506_s26, %s1502_s25 }
  0x1b   : > { %p40_p13 = scmp.eq.s32.totalorder %s1510_s27, 0  ;;  %p1267_p0 = scmp.lt.s32.totalorder %s1510_s27, 4 }
  0x1c   : > { %s1639_s17 = scalar_select %p30_p11, %s1506_s26, %s32_s16  }
  0x1d   : > { %p41_p3 = por %p40_p13, %p39_p12  ;;  %p1643_p5 = por %p195_p2, %p39_p12 }
  0x1e   : > { %s272_s21 = sand.u32 1, %s1506_s26   ;;  %s1196_s22 = sshll.u32 %s1510_s27, 8 }
  0x1f   : > { %s1052_s15 = sshll.u32 %s272_s21, 8  ;;  %s282_s20 = scalar_lea.hbm %s1800_s0, %s1196_s22 }
  0x20   : > { %s283_s29 = sshll.u32 %s282_s20, 4  ;;  %s276_s9 = scalar_lea.vmem [#allocation2], %s1052_s15  ;;  %s284_s29 = int_to_ptr.hbm [resolvable:$true] %s283_s29 }
  0x21   : > { %s285_s10 = sshll.u32 %s276_s9, 4  ;;  %p1654_p7 = pnand %p1267_p0, %p41_p3  ;;  %s286_s10 = int_to_ptr.vmem [resolvable:$true] %s285_s10 }
  0x22   : > { %s273_s14 = scalar_lea.sflag [#allocation3], %s272_s21  ;;  %s1406_s16 = sshra.s32 %s284_s29, 4  ;;  %s1407_s16 = int_to_ptr.hbm [resolvable:$true] %s1406_s16 }
  0x23   : > { %s1408_s1 = scalar_lea.hbm %s1407_s16, 256  ;;  %p1410_p9 = pneg %p1654_p7 }
  0x24   : > { %p1409_p2 = scmp.ne.s32.totalorder %s1407_s16, %s1408_s1  ;;  %s1413_s23 = scalar_lea.hbm %s1800_s0, 1024 }
  0x25   : > { %p1414_p12 = scmp.lt.s32.totalorder %s1407_s16, %s1800_s0  ;;  %p1415_p13 = scmp.lt.s32.totalorder %s1413_s23, %s1408_s1 }
  0x26   : > { %p1411_p10 = pnand %p1410_p9, %p1409_p2 }
  0x27   : > { %p1416_p0 = por %p1415_p13, %p1414_p12 }
  0x28   : > { %p1412_p11 = pneg %p1411_p10 }
  0x2a   : > { %p1417_p3 = pnand %p1416_p0, %p1412_p11 }
  0x2c   : > { %1420 = shalt.err (!%p1417_p3)
}
  0x2d   : > { %s1517_s21 = smov 256   ;;  %s1518_s9 = smov 16  }
  0x2e   : > { %1259 = dma.hbm_to_vmem [thread:$0]  (!%p1654_p7), %s284_s29, 4096, %s286_s10, %s273_s14, %s1517_s21, %s1517_s21, %s1518_s9  }
  0x2f   : > { %297 = sbr.rel (%p1604_p8) target bundleno = 635 (0x27b), region = 48  ;;  %s1671_s22 = sand.u32 (!%p1604_p8), 1, %s1502_s25  }
  0x30   : > { %s1057_s15 = sshll.u32 (!%p1604_p8), %s1671_s22, 8  ;;  %s300_s16 = scalar_lea.sflag (!%p1604_p8), [#allocation3], %s1671_s22 }
  0x31   : > { %s1675_s1 = scalar_lea.vmem (!%p1604_p8), [#allocation2], %s1057_s15 }
  0x34   : > { %1481 = dma.done.wait (%p1591_p4), %s300_s16, 4096  }
  0x35   : > { %1483 = vsyncadd (%p1591_p4), %s300_s16, 4294963200 }
  0x36   : > { %1485 = dma.done.wait (%p46_p1), [#allocation6], 3072  }
  0x37   : > { %1487 = vsyncadd (%p46_p1), [#allocation6], 4294964224 }
  0x38   : > { %1489 = dma.done.wait (%p46_p1), [#allocation9], 1024  }
  0x39   : > { %1491 = vsyncadd (%p46_p1), [#allocation9], 4294966272  ;;  %v1204_v0 = vld [vmem:[#allocation5 + $0x38] sm:$0xff]  ;;  %v1203_v2 = vld [vmem:[#allocation5 + $0x30] sm:$0xff]  ;;  %s1061_s13 = sshll.u32 %s1671_s22, 7  ;;  %s1229_s20 = sshll.u32 %s1582_s28, 7 }
  0x3a   : > { %v1212_v1 = vld [vmem:[#allocation5 + $0x78] sm:$0xff]  ;;  %532 = vmatpush.bf16.msra.mxu0 %v1204_v0  ;;  %v1211_v3 = vld [vmem:[#allocation5 + $0x70] sm:$0xff]  ;;  %v1202_v4 = vld [vmem:[#allocation5 + $0x28] sm:$0xff]  ;;  %s1749_s19 = scalar_lea.vmem [#allocation10], %s1061_s13  ;;  %s940_s15 = scalar_lea.hbm %s1807_s7, %s1229_s20 }
  0x3b   : > { %581 = vmatpush.bf16.msra.mxu1 %v1212_v1  ;;  %v1210_v5 = vld [vmem:[#allocation5 + $0x68] sm:$0xff]  ;;  %v1201_v6 = vld [vmem:[#allocation5 + $0x20] sm:$0xff]  ;;  %v1200_v8 = vld [vmem:[#allocation5 + $0x18] sm:$0xff]  ;;  %s941_s16 = sshll.u32 %s1749_s19, 4  ;;  %s929_s30 = scalar_lea.sflag [#allocation4], %s1671_s22  ;;  %s942_s16 = int_to_ptr.vmem [resolvable:$true] %s941_s16 }
  0x3c   : > { %v1209_v7 = vld [vmem:[#allocation5 + $0x60] sm:$0xff]  ;;  %v1208_v9 = vld [vmem:[#allocation5 + $0x58] sm:$0xff]  ;;  %v1199_v10 = vld [vmem:[#allocation5 + $0x10] sm:$0xff]  ;;  %s1456_s13 = scalar_lea.hbm %s1807_s7, 512 }
  0x3d   : > { %v1207_v11 = vld [vmem:[#allocation5 + $0x50] sm:$0xff]  ;;  %v1198_v12 = vld [vmem:[#allocation5 + $0x8] sm:$0xff]  ;;  %v1197_v14 = vld [vmem:[#allocation5] sm:$0xff] }
  0x3e   : > { %533 = vmatpush.bf16.msra.mxu0 %v1203_v2  ;;  %v1206_v13 = vld [vmem:[#allocation5 + $0x48] sm:$0xff]  ;;  %v1205_v15 = vld [vmem:[#allocation5 + $0x40] sm:$0xff]  ;;  %v354_v17 = vld [vmem:[%s1675_s1 + $0x10] sm:$0xff] }
  0x3f   : > { %582 = vmatpush.bf16.msra.mxu1 %v1211_v3  ;;  %v352_v16 = vld [vmem:[%s1675_s1] sm:$0xff]  ;;  %v353_v18 = vld [vmem:[%s1675_s1 + $0x8] sm:$0xff]  ;;  %v355_v19 = vld [vmem:[%s1675_s1 + $0x18] sm:$0xff] }
  0x40   : > { %v384_v20 = vpack.c.bf16 %v354_v17, %v352_v16  ;;  %v385_v21 = vpack.c.bf16 %v355_v19, %v353_v18  ;;  %v356_v22 = vld [vmem:[%s1675_s1 + $0x20] sm:$0xff]  ;;  %v358_v23 = vld [vmem:[%s1675_s1 + $0x30] sm:$0xff]  ;;  %v357_v24 = vld [vmem:[%s1675_s1 + $0x28] sm:$0xff] }
  0x41   : > { %v359_v25 = vld [vmem:[%s1675_s1 + $0x38] sm:$0xff]  ;;  %v386_v26 = vpack.c.bf16 %v358_v23, %v356_v22  ;;  %v360_v28 = vld [vmem:[%s1675_s1 + $0x40] sm:$0xff]  ;;  %v362_v29 = vld [vmem:[%s1675_s1 + $0x50] sm:$0xff] }
  0x42   : > { %534 = vmatpush.bf16.msra.mxu0 %v1202_v4  ;;  %v387_v27 = vpack.c.bf16 %v359_v25, %v357_v24  ;;  %v361_v30 = vld [vmem:[%s1675_s1 + $0x48] sm:$0xff]  ;;  %v363_v31 = vld [vmem:[%s1675_s1 + $0x58] sm:$0xff]  ;;  %v388_v32 = vpack.c.bf16 %v362_v29, %v360_v28  ;;  %v364_v34 = vld [vmem:[%s1675_s1 + $0x60] sm:$0xff] }
  0x43   : > { %583 = vmatpush.bf16.msra.mxu1 %v1210_v5  ;;  %v389_v33 = vpack.c.bf16 %v363_v31, %v361_v30  ;;  %v366_v35 = vld [vmem:[%s1675_s1 + $0x70] sm:$0xff]  ;;  %v365_v36 = vld [vmem:[%s1675_s1 + $0x68] sm:$0xff]  ;;  %v367_v37 = vld [vmem:[%s1675_s1 + $0x78] sm:$0xff] }
  0x44   : > { %v390_v38 = vpack.c.bf16 %v366_v35, %v364_v34  ;;  %v391_v39 = vpack.c.bf16 %v367_v37, %v365_v36  ;;  %v368_v40 = vld [vmem:[%s1675_s1 + $0x80] sm:$0xff]  ;;  %v370_v41 = vld [vmem:[%s1675_s1 + $0x90] sm:$0xff]  ;;  %v369_v42 = vld [vmem:[%s1675_s1 + $0x88] sm:$0xff] }
  0x45   : > { %v371_v43 = vld [vmem:[%s1675_s1 + $0x98] sm:$0xff]  ;;  %v392_v44 = vpack.c.bf16 %v370_v41, %v368_v40  ;;  %v372_v47 = vld [vmem:[%s1675_s1 + $0xa0] sm:$0xff]  ;;  %v374_v48 = vld [vmem:[%s1675_s1 + $0xb0] sm:$0xff] }
  0x46   : > { %535 = vmatpush.bf16.msra.mxu0 %v1201_v6  ;;  %v393_v45 = vpack.c.bf16 %v371_v43, %v369_v42  ;;  %v1220_v46 = vld [vmem:[#allocation7 + $0x38] sm:$0xff]  ;;  %v373_v49 = vld [vmem:[%s1675_s1 + $0xa8] sm:$0xff]  ;;  %v394_v51 = vpack.c.bf16 %v374_v48, %v372_v47  ;;  %v1219_v53 = vld [vmem:[#allocation7 + $0x30] sm:$0xff] }
  0x47   : > { %584 = vmatpush.bf16.msra.mxu1 %v1209_v7  ;;  %722 = vmatpush.bf16.msra.mxu2 %v1220_v46  ;;  %v375_v50 = vld [vmem:[%s1675_s1 + $0xb8] sm:$0xff]  ;;  %v1218_v54 = vld [vmem:[#allocation7 + $0x28] sm:$0xff]  ;;  %v1217_v55 = vld [vmem:[#allocation7 + $0x20] sm:$0xff] }
  0x48   : > { %v395_v52 = vpack.c.bf16 %v375_v50, %v373_v49  ;;  %v376_v56 = vld [vmem:[%s1675_s1 + $0xc0] sm:$0xff]  ;;  %v378_v57 = vld [vmem:[%s1675_s1 + $0xd0] sm:$0xff]  ;;  %v377_v58 = vld [vmem:[%s1675_s1 + $0xc8] sm:$0xff] }
  0x49   : > { %v379_v59 = vld [vmem:[%s1675_s1 + $0xd8] sm:$0xff]  ;;  %v396_v60 = vpack.c.bf16 %v378_v57, %v376_v56  ;;  %v1215_v63 = vld [vmem:[#allocation7 + $0x10] sm:$0xff]  ;;  %v1214_v0 = vld [vmem:[#allocation7 + $0x8] sm:$0xff] }
  0x4a   : > { %536 = vmatpush.bf16.msra.mxu0 %v1200_v8  ;;  %v397_v61 = vpack.c.bf16 %v379_v59, %v377_v58  ;;  %v1216_v62 = vld [vmem:[#allocation7 + $0x18] sm:$0xff]  ;;  %v380_v1 = vld [vmem:[%s1675_s1 + $0xe0] sm:$0xff]  ;;  %v382_v2 = vld [vmem:[%s1675_s1 + $0xf0] sm:$0xff] }
  0x4b   : > { %585 = vmatpush.bf16.msra.mxu1 %v1208_v9  ;;  %723 = vmatpush.bf16.msra.mxu2 %v1219_v53  ;;  %v381_v3 = vld [vmem:[%s1675_s1 + $0xe8] sm:$0xff]  ;;  %v383_v4 = vld [vmem:[%s1675_s1 + $0xf8] sm:$0xff]  ;;  %v1213_v5 = vld [vmem:[#allocation7] sm:$0xff]  ;;  %v398_v6 = vpack.c.bf16 %v382_v2, %v380_v1  ;;  %s943_s1 = sshll.u32 %s940_s15, 4  ;;  %s944_s1 = int_to_ptr.hbm [resolvable:$true] %s943_s1 }
  0x4c   : > { %v399_v7 = vpack.c.bf16 %v383_v4, %v381_v3  ;;  %s1450_s12 = sshra.s32 %s944_s1, 4  ;;  %s1451_s12 = int_to_ptr.hbm [resolvable:$true] %s1450_s12 }
  0x4d   : > { %s1452_s29 = scalar_lea.hbm %s1451_s12, 128  ;;  %p1457_p7 = scmp.lt.s32.totalorder %s1451_s12, %s1807_s7 }
  0x4e   : > { %537 = vmatpush.bf16.msra.mxu0 %v1199_v10  ;;  %v1724_v10 = vld [vmem:[%s1802_s2] ss:$0 sm:$0xff]  ;;  %p1453_p1 = scmp.ne.s32.totalorder %s1451_s12, %s1452_s29  ;;  %p1458_p2 = scmp.lt.s32.totalorder %s1456_s13, %s1452_s29 }
  0x4f   : > { %586 = vmatpush.bf16.msra.mxu1 %v1207_v11  ;;  %724 = vmatpush.bf16.msra.mxu2 %v1218_v54 }
  0x50   : > { %p1454_p4 = pnand %p1453_p1, %p1643_p5  ;;  %p1459_p9 = por %p1458_p2, %p1457_p7 }
  0x52   : > { %538 = vmatpush.bf16.msra.mxu0 %v1198_v12  ;;  %p1455_p8 = pneg %p1454_p4 }
  0x53   : > { %587 = vmatpush.bf16.msra.mxu1 %v1206_v13  ;;  %725 = vmatpush.bf16.msra.mxu2 %v1217_v55 }
  0x54   : > { %p1460_p10 = pnand %p1459_p9, %p1455_p8 }
  0x56   : > { %539 = vmatpush.bf16.msra.mxu0 %v1197_v14 }
  0x57   : > { %588 = vmatpush.bf16.msra.mxu1 %v1205_v15  ;;  %726 = vmatpush.bf16.msra.mxu2 %v1216_v62 }
  0x59   : > { %540 = vmatmul.bf16.vlgmr.msra.gmra.mxu0 %v384_v20 }
  0x5a   : > { %589 = vmatmul.bf16.vlgmr.msra.gmra.mxu1 %v385_v21 }
  0x5b   : > { %727 = vmatpush.bf16.msra.mxu2 %v1215_v63 }
  0x5f   : > { %728 = vmatpush.bf16.msra.mxu2 %v1214_v0 }
  0x63   : > { %729 = vmatpush.bf16.msra.mxu2 %v1213_v5 }
  0x69   : > { %545 = vmatmul.bf16.gmra.mxu0 %v386_v26 }
  0x6a   : > { %594 = vmatmul.bf16.gmra.mxu1 %v387_v27 }
  0x79   : > { %550 = vmatmul.bf16.gmra.mxu0 %v388_v32 }
  0x7a   : > { %599 = vmatmul.bf16.gmra.mxu1 %v389_v33 }
  0x89   : > { %555 = vmatmul.bf16.gmra.mxu0 %v390_v38 }
  0x8a   : > { %604 = vmatmul.bf16.gmra.mxu1 %v391_v39 }
  0x99   : > { %560 = vmatmul.bf16.gmra.mxu0 %v392_v44 }
  0x9a   : > { %609 = vmatmul.bf16.gmra.mxu1 %v393_v45 }
  0xa9   : > { %565 = vmatmul.bf16.gmra.mxu0 %v394_v51 }
  0xaa   : > { %614 = vmatmul.bf16.gmra.mxu1 %v395_v52 }
  0xb9   : > { %570 = vmatmul.bf16.gmra.mxu0 %v396_v60 }
  0xba   : > { %619 = vmatmul.bf16.gmra.mxu1 %v397_v61 }
  0xc9   : > { %575 = vmatmul.bf16.gmra.mxu0 %v398_v6 }
  0xca   : > { %624 = vmatmul.bf16.gmra.mxu1 %v399_v7 }
  0xd6   : > { %v541_v8 = vpop.f32.mrf.mxu0 }
  0xd7   : > { %v590_v9 = vpop.f32.mrf.mxu1  ;;  %v542_v11 = vadd.f32 %v1724_v10, %v541_v8 }
  0xd9   : > { %v591_v14 = vadd.f32 %v590_v9, %v542_v11 }
  0xdb   : > { %v630_v17 = vmax.f32 %v591_v14, 0.0  ;;  %v1228_v14 = vld [vmem:[#allocation8 + $0x38] sm:$0xff] }
  0xdc   : > { %863 = vmatpush.bf16.msra.mxu3 %v1228_v14 }
  0xde   : > { %v543_v12 = vpop.f32.mrf.mxu0 }
  0xdf   : > { %v592_v13 = vpop.f32.mrf.mxu1  ;;  %v544_v15 = vadd.f32 %v1724_v10, %v543_v12 }
  0xe1   : > { %v593_v16 = vadd.f32 %v592_v13, %v544_v15  ;;  %v1227_v15 = vld [vmem:[#allocation8 + $0x30] sm:$0xff] }
  0xe2   : > { %864 = vmatpush.bf16.msra.mxu3 %v1227_v15 }
  0xe3   : > { %v631_v18 = vmax.f32 %v593_v16, 0.0 }
  0xe5   : > { %v646_v19 = vpack.c.bf16 %v631_v18, %v630_v17  ;;  %v1226_v17 = vld [vmem:[#allocation8 + $0x28] sm:$0xff] }
  0xe6   : > { %v546_v20 = vpop.f32.mrf.mxu0  ;;  %865 = vmatpush.bf16.msra.mxu3 %v1226_v17 }
  0xe7   : > { %v595_v21 = vpop.f32.mrf.mxu1  ;;  %730 = vmatmul.bf16.vlgmr.msra.gmra.mxu2 %v646_v19  ;;  %v547_v22 = vadd.f32 %v1724_v10, %v546_v20 }
  0xe9   : > { %v596_v25 = vadd.f32 %v595_v21, %v547_v22 }
  0xeb   : > { %v632_v28 = vmax.f32 %v596_v25, 0.0 }
  0xee   : > { %v548_v23 = vpop.f32.mrf.mxu0 }
  0xef   : > { %v597_v24 = vpop.f32.mrf.mxu1  ;;  %v549_v26 = vadd.f32 %v1724_v10, %v548_v23  ;;  %v1225_v23 = vld [vmem:[#allocation8 + $0x20] sm:$0xff] }
  0xf0   : > { %866 = vmatpush.bf16.msra.mxu3 %v1225_v23 }
  0xf1   : > { %v598_v27 = vadd.f32 %v597_v24, %v549_v26 }
  0xf3   : > { %v633_v29 = vmax.f32 %v598_v27, 0.0 }
  0xf5   : > { %v647_v30 = vpack.c.bf16 %v633_v29, %v632_v28  ;;  %v1224_v29 = vld [vmem:[#allocation8 + $0x18] sm:$0xff] }
  0xf6   : > { %v551_v31 = vpop.f32.mrf.mxu0  ;;  %867 = vmatpush.bf16.msra.mxu3 %v1224_v29 }
  0xf7   : > { %v600_v32 = vpop.f32.mrf.mxu1  ;;  %735 = vmatmul.bf16.gmra.mxu2 %v647_v30  ;;  %v552_v33 = vadd.f32 %v1724_v10, %v551_v31  ;;  %v1223_v31 = vld [vmem:[#allocation8 + $0x10] sm:$0xff] }
  0xf9   : > { %v601_v36 = vadd.f32 %v600_v32, %v552_v33 }
  0xfa   : > { %868 = vmatpush.bf16.msra.mxu3 %v1223_v31 }
  0xfb   : > { %v634_v39 = vmax.f32 %v601_v36, 0.0  ;;  %v1222_v36 = vld [vmem:[#allocation8 + $0x8] sm:$0xff] }
  0xfe   : > { %v553_v34 = vpop.f32.mrf.mxu0  ;;  %869 = vmatpush.bf16.msra.mxu3 %v1222_v36 }
  0xff   : > { %v602_v35 = vpop.f32.mrf.mxu1  ;;  %v554_v37 = vadd.f32 %v1724_v10, %v553_v34 }
 0x101   : > { %v603_v38 = vadd.f32 %v602_v35, %v554_v37 }
 0x103   : > { %v635_v40 = vmax.f32 %v603_v38, 0.0 }
 0x105   : > { %v648_v41 = vpack.c.bf16 %v635_v40, %v634_v39  ;;  %v1221_v40 = vld [vmem:[#allocation8] sm:$0xff] }
 0x106   : > { %v556_v42 = vpop.f32.mrf.mxu0  ;;  %870 = vmatpush.bf16.msra.mxu3 %v1221_v40 }
 0x107   : > { %v605_v43 = vpop.f32.mrf.mxu1  ;;  %740 = vmatmul.bf16.gmra.mxu2 %v648_v41  ;;  %v557_v44 = vadd.f32 %v1724_v10, %v556_v42 }
 0x109   : > { %v606_v47 = vadd.f32 %v605_v43, %v557_v44  ;;  %v1314_v43 = vld [vmem:[%s1804_s4] ss:$0 sm:$0xff] }
 0x10b   : > { %v636_v50 = vmax.f32 %v606_v47, 0.0 }
 0x10e   : > { %v558_v45 = vpop.f32.mrf.mxu0 }
 0x10f   : > { %v607_v46 = vpop.f32.mrf.mxu1  ;;  %v559_v48 = vadd.f32 %v1724_v10, %v558_v45 }
 0x111   : > { %v608_v49 = vadd.f32 %v607_v46, %v559_v48 }
 0x113   : > { %v637_v51 = vmax.f32 %v608_v49, 0.0 }
 0x115   : > { %v649_v52 = vpack.c.bf16 %v637_v51, %v636_v50 }
 0x116   : > { %v561_v53 = vpop.f32.mrf.mxu0 }
 0x117   : > { %v610_v54 = vpop.f32.mrf.mxu1  ;;  %745 = vmatmul.bf16.gmra.mxu2 %v649_v52  ;;  %v562_v55 = vadd.f32 %v1724_v10, %v561_v53 }
 0x119   : > { %v611_v58 = vadd.f32 %v610_v54, %v562_v55 }
 0x11b   : > { %v638_v61 = vmax.f32 %v611_v58, 0.0 }
 0x11e   : > { %v563_v56 = vpop.f32.mrf.mxu0 }
 0x11f   : > { %v612_v57 = vpop.f32.mrf.mxu1  ;;  %v564_v59 = vadd.f32 %v1724_v10, %v563_v56 }
 0x121   : > { %v613_v60 = vadd.f32 %v612_v57, %v564_v59 }
 0x123   : > { %v639_v62 = vmax.f32 %v613_v60, 0.0 }
 0x125   : > { %v650_v63 = vpack.c.bf16 %v639_v62, %v638_v61 }
 0x126   : > { %v566_v0 = vpop.f32.mrf.mxu0 }
 0x127   : > { %v615_v1 = vpop.f32.mrf.mxu1  ;;  %750 = vmatmul.bf16.gmra.mxu2 %v650_v63  ;;  %v567_v2 = vadd.f32 %v1724_v10, %v566_v0 }
 0x129   : > { %v616_v5 = vadd.f32 %v615_v1, %v567_v2 }
 0x12b   : > { %v640_v8 = vmax.f32 %v616_v5, 0.0 }
 0x12e   : > { %v568_v3 = vpop.f32.mrf.mxu0 }
 0x12f   : > { %v617_v4 = vpop.f32.mrf.mxu1  ;;  %v569_v6 = vadd.f32 %v1724_v10, %v568_v3 }
 0x131   : > { %v618_v7 = vadd.f32 %v617_v4, %v569_v6 }
 0x133   : > { %v641_v9 = vmax.f32 %v618_v7, 0.0 }
 0x135   : > { %v651_v11 = vpack.c.bf16 %v641_v9, %v640_v8 }
 0x136   : > { %v571_v12 = vpop.f32.mrf.mxu0 }
 0x137   : > { %v620_v13 = vpop.f32.mrf.mxu1  ;;  %755 = vmatmul.bf16.gmra.mxu2 %v651_v11  ;;  %v572_v16 = vadd.f32 %v1724_v10, %v571_v12 }
 0x139   : > { %v621_v20 = vadd.f32 %v620_v13, %v572_v16 }
 0x13b   : > { %v642_v24 = vmax.f32 %v621_v20, 0.0 }
 0x13e   : > { %v573_v18 = vpop.f32.mrf.mxu0 }
 0x13f   : > { %v622_v19 = vpop.f32.mrf.mxu1  ;;  %v574_v21 = vadd.f32 %v1724_v10, %v573_v18 }
 0x141   : > { %v623_v22 = vadd.f32 %v622_v19, %v574_v21 }
 0x143   : > { %v643_v25 = vmax.f32 %v623_v22, 0.0 }
 0x145   : > { %v652_v26 = vpack.c.bf16 %v643_v25, %v642_v24 }
 0x146   : > { %v576_v27 = vpop.f32.mrf.mxu0 }
 0x147   : > { %v625_v28 = vpop.f32.mrf.mxu1  ;;  %760 = vmatmul.bf16.gmra.mxu2 %v652_v26  ;;  %v577_v30 = vadd.f32 %v1724_v10, %v576_v27 }
 0x149   : > { %v626_v33 = vadd.f32 %v625_v28, %v577_v30 }
 0x14b   : > { %v644_v38 = vmax.f32 %v626_v33, 0.0 }
 0x14e   : > { %v578_v32 = vpop.f32.mrf.mxu0 }
 0x14f   : > { %v579_v34 = vadd.f32 %v1724_v10, %v578_v32  ;;  %v627_v35 = vpop.f32.mrf.mxu1 }
 0x151   : > { %v628_v37 = vadd.f32 %v627_v35, %v579_v34  ;;  %v1315_v35 = vld [vmem:[%s1806_s6] ss:$0 sm:$0xff] }
 0x153   : > { %v645_v39 = vmax.f32 %v628_v37, 0.0 }
 0x155   : > { %v653_v41 = vpack.c.bf16 %v645_v39, %v644_v38 }
 0x157   : > { %765 = vmatmul.bf16.gmra.mxu2 %v653_v41 }
 0x16a   : > { %v731_v42 = vpop.f32.mrf.mxu2 }
 0x16b   : > { %v732_v44 = vadd.f32 %v1314_v43, %v731_v42 }
 0x16d   : > { %v771_v47 = vmax.f32 %v732_v44, 0.0 }
 0x172   : > { %v733_v45 = vpop.f32.mrf.mxu2 }
 0x173   : > { %v734_v46 = vadd.f32 %v1314_v43, %v733_v45 }
 0x175   : > { %v772_v10 = vmax.f32 %v734_v46, 0.0 }
 0x177   : > { %v787_v48 = vpack.c.bf16 %v772_v10, %v771_v47 }
 0x179   : > { %871 = vmatmul.bf16.vlgmr.msra.gmra.mxu3 %v787_v48 }
 0x17a   : > { %v736_v49 = vpop.f32.mrf.mxu2 }
 0x17b   : > { %v737_v50 = vadd.f32 %v1314_v43, %v736_v49 }
 0x17d   : > { %v773_v53 = vmax.f32 %v737_v50, 0.0 }
 0x182   : > { %v738_v51 = vpop.f32.mrf.mxu2 }
 0x183   : > { %v739_v52 = vadd.f32 %v1314_v43, %v738_v51 }
 0x185   : > { %v774_v54 = vmax.f32 %v739_v52, 0.0 }
 0x187   : > { %v788_v55 = vpack.c.bf16 %v774_v54, %v773_v53 }
 0x189   : > { %876 = vmatmul.bf16.gmra.mxu3 %v788_v55 }
 0x18a   : > { %v741_v56 = vpop.f32.mrf.mxu2 }
 0x18b   : > { %v742_v57 = vadd.f32 %v1314_v43, %v741_v56 }
 0x18d   : > { %v775_v60 = vmax.f32 %v742_v57, 0.0 }
 0x192   : > { %v743_v58 = vpop.f32.mrf.mxu2 }
 0x193   : > { %v744_v59 = vadd.f32 %v1314_v43, %v743_v58 }
 0x195   : > { %v776_v61 = vmax.f32 %v744_v59, 0.0 }
 0x197   : > { %v789_v62 = vpack.c.bf16 %v776_v61, %v775_v60 }
 0x199   : > { %881 = vmatmul.bf16.gmra.mxu3 %v789_v62 }
 0x19a   : > { %v746_v63 = vpop.f32.mrf.mxu2 }
 0x19b   : > { %v747_v0 = vadd.f32 %v1314_v43, %v746_v63 }
 0x19d   : > { %v777_v3 = vmax.f32 %v747_v0, 0.0 }
 0x1a2   : > { %v748_v1 = vpop.f32.mrf.mxu2 }
 0x1a3   : > { %v749_v2 = vadd.f32 %v1314_v43, %v748_v1 }
 0x1a5   : > { %v778_v4 = vmax.f32 %v749_v2, 0.0 }
 0x1a7   : > { %v790_v5 = vpack.c.bf16 %v778_v4, %v777_v3 }
 0x1a9   : > { %886 = vmatmul.bf16.gmra.mxu3 %v790_v5 }
 0x1aa   : > { %v751_v6 = vpop.f32.mrf.mxu2 }
 0x1ab   : > { %v752_v7 = vadd.f32 %v1314_v43, %v751_v6 }
 0x1ad   : > { %v779_v11 = vmax.f32 %v752_v7, 0.0 }
 0x1b2   : > { %v753_v8 = vpop.f32.mrf.mxu2 }
 0x1b3   : > { %v754_v9 = vadd.f32 %v1314_v43, %v753_v8 }
 0x1b5   : > { %v780_v12 = vmax.f32 %v754_v9, 0.0 }
 0x1b7   : > { %v791_v13 = vpack.c.bf16 %v780_v12, %v779_v11 }
 0x1b9   : > { %891 = vmatmul.bf16.gmra.mxu3 %v791_v13 }
 0x1ba   : > { %v756_v14 = vpop.f32.mrf.mxu2 }
 0x1bb   : > { %v757_v15 = vadd.f32 %v1314_v43, %v756_v14 }
 0x1bd   : > { %v781_v18 = vmax.f32 %v757_v15, 0.0 }
 0x1c2   : > { %v758_v16 = vpop.f32.mrf.mxu2 }
 0x1c3   : > { %v759_v17 = vadd.f32 %v1314_v43, %v758_v16 }
 0x1c5   : > { %v782_v19 = vmax.f32 %v759_v17, 0.0 }
 0x1c7   : > { %v792_v20 = vpack.c.bf16 %v782_v19, %v781_v18 }
 0x1c9   : > { %896 = vmatmul.bf16.gmra.mxu3 %v792_v20 }
 0x1ca   : > { %v761_v21 = vpop.f32.mrf.mxu2 }
 0x1cb   : > { %v762_v22 = vadd.f32 %v1314_v43, %v761_v21 }
 0x1cd   : > { %v783_v25 = vmax.f32 %v762_v22, 0.0 }
 0x1d2   : > { %v763_v23 = vpop.f32.mrf.mxu2 }
 0x1d3   : > { %v764_v24 = vadd.f32 %v1314_v43, %v763_v23 }
 0x1d5   : > { %v784_v26 = vmax.f32 %v764_v24, 0.0 }
 0x1d7   : > { %v793_v27 = vpack.c.bf16 %v784_v26, %v783_v25 }
 0x1d9   : > { %901 = vmatmul.bf16.gmra.mxu3 %v793_v27 }
 0x1da   : > { %v766_v28 = vpop.f32.mrf.mxu2 }
 0x1db   : > { %v767_v29 = vadd.f32 %v1314_v43, %v766_v28 }
 0x1dd   : > { %v785_v32 = vmax.f32 %v767_v29, 0.0 }
 0x1e2   : > { %v768_v30 = vpop.f32.mrf.mxu2 }
 0x1e3   : > { %v769_v31 = vadd.f32 %v1314_v43, %v768_v30 }
 0x1e5   : > { %v786_v33 = vmax.f32 %v769_v31, 0.0 }
 0x1e7   : > { %v794_v34 = vpack.c.bf16 %v786_v33, %v785_v32 }
 0x1e9   : > { %906 = vmatmul.bf16.gmra.mxu3 %v794_v34 }
 0x1fc   : > { %v872_v36 = vpop.f32.mrf.mxu3 }
 0x1fd   : > { %v873_v37 = vadd.f32 %v1315_v35, %v872_v36 }
 0x1ff   : > { %912 = vst [vmem:[%s1749_s19] sm:$0xff] %v873_v37 }
 0x204   : > { %v874_v38 = vpop.f32.mrf.mxu3 }
 0x205   : > { %v875_v39 = vadd.f32 %v1315_v35, %v874_v38 }
 0x207   : > { %913 = vst [vmem:[%s1749_s19 + $0x8] sm:$0xff] %v875_v39 }
 0x20c   : > { %v877_v40 = vpop.f32.mrf.mxu3 }
 0x20d   : > { %v878_v41 = vadd.f32 %v1315_v35, %v877_v40 }
 0x20f   : > { %914 = vst [vmem:[%s1749_s19 + $0x10] sm:$0xff] %v878_v41 }
 0x214   : > { %v879_v42 = vpop.f32.mrf.mxu3 }
 0x215   : > { %v880_v43 = vadd.f32 %v1315_v35, %v879_v42 }
 0x217   : > { %915 = vst [vmem:[%s1749_s19 + $0x18] sm:$0xff] %v880_v43 }
 0x21c   : > { %v882_v44 = vpop.f32.mrf.mxu3 }
 0x21d   : > { %v883_v45 = vadd.f32 %v1315_v35, %v882_v44 }
 0x21f   : > { %916 = vst [vmem:[%s1749_s19 + $0x20] sm:$0xff] %v883_v45 }
 0x224   : > { %v884_v46 = vpop.f32.mrf.mxu3 }
 0x225   : > { %v885_v47 = vadd.f32 %v1315_v35, %v884_v46 }
 0x227   : > { %917 = vst [vmem:[%s1749_s19 + $0x28] sm:$0xff] %v885_v47 }
 0x22c   : > { %v887_v10 = vpop.f32.mrf.mxu3 }
 0x22d   : > { %v888_v48 = vadd.f32 %v1315_v35, %v887_v10 }
 0x22f   : > { %918 = vst [vmem:[%s1749_s19 + $0x30] sm:$0xff] %v888_v48 }
 0x234   : > { %v889_v49 = vpop.f32.mrf.mxu3 }
 0x235   : > { %v890_v50 = vadd.f32 %v1315_v35, %v889_v49 }
 0x237   : > { %919 = vst [vmem:[%s1749_s19 + $0x38] sm:$0xff] %v890_v50 }
 0x23c   : > { %v892_v51 = vpop.f32.mrf.mxu3 }
 0x23d   : > { %v893_v52 = vadd.f32 %v1315_v35, %v892_v51 }
 0x23f   : > { %920 = vst [vmem:[%s1749_s19 + $0x40] sm:$0xff] %v893_v52 }
 0x244   : > { %v894_v53 = vpop.f32.mrf.mxu3 }
 0x245   : > { %v895_v54 = vadd.f32 %v1315_v35, %v894_v53 }
 0x247   : > { %921 = vst [vmem:[%s1749_s19 + $0x48] sm:$0xff] %v895_v54 }
 0x24c   : > { %v897_v55 = vpop.f32.mrf.mxu3 }
 0x24d   : > { %v898_v56 = vadd.f32 %v1315_v35, %v897_v55 }
 0x24f   : > { %922 = vst [vmem:[%s1749_s19 + $0x50] sm:$0xff] %v898_v56 }
 0x254   : > { %v899_v57 = vpop.f32.mrf.mxu3 }
 0x255   : > { %v900_v58 = vadd.f32 %v1315_v35, %v899_v57 }
 0x257   : > { %923 = vst [vmem:[%s1749_s19 + $0x58] sm:$0xff] %v900_v58 }
 0x25c   : > { %v902_v59 = vpop.f32.mrf.mxu3 }
 0x25d   : > { %v903_v60 = vadd.f32 %v1315_v35, %v902_v59 }
 0x25f   : > { %924 = vst [vmem:[%s1749_s19 + $0x60] sm:$0xff] %v903_v60 }
 0x264   : > { %v904_v61 = vpop.f32.mrf.mxu3 }
 0x265   : > { %v905_v62 = vadd.f32 %v1315_v35, %v904_v61 }
 0x267   : > { %925 = vst [vmem:[%s1749_s19 + $0x68] sm:$0xff] %v905_v62 }
 0x26c   : > { %v907_v63 = vpop.f32.mrf.mxu3 }
 0x26d   : > { %v908_v0 = vadd.f32 %v1315_v35, %v907_v63 }
 0x26f   : > { %926 = vst [vmem:[%s1749_s19 + $0x70] sm:$0xff] %v908_v0 }
 0x274   : > { %v909_v1 = vpop.f32.mrf.mxu3 }
 0x275   : > { %v910_v2 = vadd.f32 %v1315_v35, %v909_v1 }
 0x277   : > { %927 = vst [vmem:[%s1749_s19 + $0x78] sm:$0xff] %v910_v2 }
 0x278   : > { %1463 = shalt.err (!%p1460_p10)
}
 0x279   : > { %s1519_s22 = smov 128   ;;  %s1520_s19 = smov 8  }
 0x27a   : > { %1244 = dma.vmem_to_hbm [thread:$0]  (%p1643_p5), %s942_s16, 2048, %s944_s1, %s929_s30, %s1519_s22, %s1519_s22, %s1520_s19  }
 0x27b PF: > { %p1271_p11 = scmp.ge.s32.totalorder %s1510_s27, 2  ;;  %s958_s20 = sand.u32 1, %s1498_s24  }
 0x27c   : > { %s959_s21 = scalar_lea.sflag [#allocation4], %s958_s20 }
 0x27d   : > { %p1261_p12 = pnand %p1271_p11, %p1596_p6 }
 0x27f   : > { %p1262_p13 = pneg %p1261_p12 }
 0x281   : > { %1493 = dma.done.wait (%p1262_p13), %s959_s21, 2048  }
 0x282   : > { %1495 = vsyncadd (%p1262_p13), %s959_s21, 4294965248  ;;  %p22_p0 = scmp.ge.s32.totalorder %s1627_s11, 6   ;;  %s1816_s24 = smov %s1502_s25 }
 0x283   : > { %s1817_s25 = smov %s1506_s26  ;;  %s1818_s26 = smov %s1639_s17 }
 0x284   : > { %s1819_s27 = smov %s1627_s11  ;;  %24 = sbr.rel (!%p22_p0) target bundleno = 9 (0x9), region = 105 }
 0x289   :  { %965 = vsyncpa [#allocation3], 1 }
 0x28a   :  { %967 = vsyncpa [#allocation3 + $0x1], 1 }
 0x28b   :  { %968 = vsyncpa [#allocation6], 1 }
 0x28c   :  { %969 = vsyncpa [#allocation9], 1 }
 0x28d   :  { %970 = vsyncpa [#allocation4], 1 }
 0x28e   :  { %972 = vsyncpa [#allocation4 + $0x1], 1 }

</bundles_post_ra>
